<compile_context>
chip_gen: v7x
topology: tpu7x:2x2x1
jax: 0.10.0
libtpu: 0.0.40
codegen_flags: <defaults>
</compile_context>

<pallas_src>
import functools

import jax
import jax.numpy as jnp
from jax import lax
from jax.experimental import pallas as pl
from jax.experimental.pallas import tpu as pltpu


def _round_up(n, m):
    return ((n + m - 1) // m) * m


def _pick_tile(dim, preferred, align):
    """Largest multiple of `align` that divides `dim` and is <= preferred."""
    preferred = max(align, min(preferred, dim))
    preferred = (preferred // align) * align
    best = align
    t = align
    while t <= preferred:
        if dim % t == 0:
            best = t
        t += align
    return best


def _sigmoid(z):
    # sigmoid(z) == 0.5 * tanh(0.5 * z) + 0.5  (one EUP op + FMA, no VPU divide)
    return 0.5 * jnp.tanh(0.5 * z) + 0.5


# ---------------------------------------------------------------------------
# Kernels
# ---------------------------------------------------------------------------
def _whole_kernel(x_ref, w_ref, b_ref, o_ref):
    """Un-gridded small-problem kernel: whole arrays resident in VMEM."""
    z = lax.dot_general(
        x_ref[...], w_ref[...],
        dimension_numbers=(((1,), (1,)), ((), ())),
        preferred_element_type=jnp.float32,
    )
    o_ref[...] = _sigmoid(z + b_ref[...]).astype(o_ref.dtype)


def _wres_kernel(x_ref, w_ref, b_ref, o_ref, *, tk):
    """grid = (M, K). Whole weight resident in VMEM; accumulate into f32 o_ref."""
    k = pl.program_id(1)

    @pl.when(k == 0)
    def _():
        o_ref[...] = jnp.zeros_like(o_ref)

    k0 = pl.multiple_of(k * tk, tk)
    o_ref[...] += lax.dot_general(
        x_ref[...], w_ref[:, pl.ds(k0, tk)],
        dimension_numbers=(((1,), (1,)), ((), ())),
        preferred_element_type=jnp.float32,
    )

    @pl.when(k == pl.num_programs(1) - 1)
    def _():
        o_ref[...] = _sigmoid(o_ref[...] + b_ref[...])


def _tiled_kernel(x_ref, w_ref, b_ref, o_ref):
    """grid = (M, N, K). General tiling; accumulate into the resident f32 o_ref."""
    k = pl.program_id(2)

    @pl.when(k == 0)
    def _():
        o_ref[...] = jnp.zeros_like(o_ref)

    o_ref[...] += lax.dot_general(
        x_ref[...], w_ref[...],
        dimension_numbers=(((1,), (1,)), ((), ())),
        preferred_element_type=jnp.float32,
    )

    @pl.when(k == pl.num_programs(2) - 1)
    def _():
        o_ref[...] = _sigmoid(o_ref[...] + b_ref[...])


# ---------------------------------------------------------------------------
# Wrapper
# ---------------------------------------------------------------------------
def linear_model_forward(x, weight, bias, *, tm=512, tn=512, tk=1024,
                         mxu_dtype=jnp.bfloat16,
                         weight_resident_bytes=4 << 20):
    """y = sigmoid(x @ weight.T + bias), matching nn.Linear + F.sigmoid (f32).

    x: (B, E), weight: (C, E) (nn.Linear layout), bias: (C,). Returns (B, C) f32.
    """
    B, E = x.shape
    C, E_w = weight.shape
    assert E == E_w and bias.shape == (C,)

    x32 = x.astype(jnp.float32)
    w32 = weight.astype(jnp.float32)
    b32 = bias.astype(jnp.float32)

    # ---- small-problem fast path: one un-gridded call, whole arrays in VMEM.
    if (B * E + C * E + B * C + C) * 4 <= (1 << 20):
        return pl.pallas_call(
            _whole_kernel,
            out_shape=jax.ShapeDtypeStruct((B, C), jnp.float32),
        )(x32, w32, b32.reshape(1, C))

    # ---- pad to hardware-friendly sizes (sublane=8 on B, lane=128 on E/C).
    B_pad = _round_up(B, 8)
    E_pad = _round_up(E, 128)
    C_pad = _round_up(C, 128)

    in_dtype = jnp.float32 if mxu_dtype is None else mxu_dtype
    in_bytes = jnp.dtype(in_dtype).itemsize

    x_p = x32 if (B_pad, E_pad) == (B, E) else jnp.pad(
        x32, ((0, B_pad - B), (0, E_pad - E)))
    w_p = w32 if (C_pad, E_pad) == (C, E) else jnp.pad(
        w32, ((0, C_pad - C), (0, E_pad - E)))
    b_p = b32 if C_pad == C else jnp.pad(b32, (0, C_pad - C))
    b_p = b_p.reshape(1, C_pad)

    # Cast MXU operands once in the wrapper (halves DMA bytes vs f32 on HBM).
    x_p = x_p.astype(in_dtype)
    w_p = w_p.astype(in_dtype)

    # Tiles that divide the padded dims exactly (no second round of padding).
    tm = _pick_tile(B_pad, tm, 8)
    tn = _pick_tile(C_pad, tn, 128)
    tk = _pick_tile(E_pad, tk, 128)

    flops = 2 * B_pad * E_pad * C_pad
    trans = B_pad * C_pad

    # ---- weight-resident path: W DMA'd from HBM exactly once.
    w_bytes = C_pad * E_pad * in_bytes
    wres_vmem = (2 * w_bytes                     # full W (double-buffer slots)
                 + 2 * tm * tk * in_bytes        # double-buffered x blocks
                 + 2 * tm * C_pad * 4            # double-buffered f32 out slab
                 + 2 * C_pad * 4)                # bias
    if w_bytes <= weight_resident_bytes and wres_vmem <= (28 << 20):
        grid = (B_pad // tm, E_pad // tk)
        out_p = pl.pallas_call(
            functools.partial(_wres_kernel, tk=tk),
            out_shape=jax.ShapeDtypeStruct((B_pad, C_pad), jnp.float32),
            grid_spec=pltpu.PrefetchScalarGridSpec(
                num_scalar_prefetch=0,
                grid=grid,
                in_specs=[
                    pl.BlockSpec((tm, tk), lambda i, k: (i, k)),        # x tile
                    pl.BlockSpec((C_pad, E_pad), lambda i, k: (0, 0)),  # W resident
                    pl.BlockSpec((1, C_pad), lambda i, k: (0, 0)),      # bias
                ],
                out_specs=pl.BlockSpec((tm, C_pad), lambda i, k: (i, 0)),
            ),
            compiler_params=pltpu.CompilerParams(
                dimension_semantics=("parallel", "arbitrary"),
                vmem_limit_bytes=max(32 << 20, min(2 * wres_vmem, 56 << 20)),
            ),
            cost_estimate=pl.CostEstimate(
                flops=flops,
                transcendentals=trans,
                bytes_accessed=(B_pad * E_pad * in_bytes      # x read once
                                + C_pad * E_pad * in_bytes    # W read once
                                + B_pad * C_pad * 4           # out written once
                                + C_pad * 4),
            ),
        )(x_p, w_p, b_p)
    else:
        # ---- general (M, N, K) tiling for large weights.
        grid = (B_pad // tm, C_pad // tn, E_pad // tk)
        tiled_vmem = (2 * tm * tk * in_bytes + 2 * tn * tk * in_bytes
                      + 2 * tm * tn * 4 + 2 * tn * 4)
        out_p = pl.pallas_call(
            _tiled_kernel,
            out_shape=jax.ShapeDtypeStruct((B_pad, C_pad), jnp.float32),
            grid_spec=pltpu.PrefetchScalarGridSpec(
                num_scalar_prefetch=0,
                grid=grid,
                in_specs=[
                    pl.BlockSpec((tm, tk), lambda i, j, k: (i, k)),  # x tile
                    pl.BlockSpec((tn, tk), lambda i, j, k: (j, k)),  # W tile (C, E)
                    pl.BlockSpec((1, tn), lambda i, j, k: (0, j)),   # bias tile
                ],
                out_specs=pl.BlockSpec((tm, tn), lambda i, j, k: (i, j)),
            ),
            compiler_params=pltpu.CompilerParams(
                dimension_semantics=("parallel", "parallel", "arbitrary"),
                vmem_limit_bytes=max(32 << 20, min(2 * tiled_vmem, 56 << 20)),
            ),
            cost_estimate=pl.CostEstimate(
                flops=flops,
                transcendentals=trans,
                bytes_accessed=((C_pad // tn) * B_pad * E_pad * in_bytes
                                + (B_pad // tm) * C_pad * E_pad * in_bytes
                                + B_pad * C_pad * 4
                                + (B_pad // tm) * C_pad * 4),
            ),
        )(x_p, w_p, b_p)

    if (B_pad, C_pad) != (B, C):
        out_p = out_p[:B, :C]
    return out_p


# ---------------------------------------------------------------------------
# Self-test
# ---------------------------------------------------------------------------
if __name__ == "__main__":
    def make_inputs(key, embed_dim, num_class, batch):
        kx, kw, kb = jax.random.split(key, 3)
        bound = 1.0 / (embed_dim ** 0.5)   # nn.Linear-style uniform init
        w = jax.random.uniform(kw, (num_class, embed_dim), jnp.float32,
                               minval=-bound, maxval=bound)
        b = jax.random.uniform(kb, (num_class,), jnp.float32,
                               minval=-bound, maxval=bound)
        x = jax.random.normal(kx, (batch, embed_dim), jnp.float32)
        return x, w, b

    key = jax.random.PRNGKey(0)
    k1, k2, k3 = jax.random.split(key, 3)

    # 1) Demo shapes (embed_dim=32, num_class=16, batch=8): fast path, exact f32.
    x, w, b = make_inputs(k1, 32, 16, 8)
    out = jax.block_until_ready(linear_model_forward(x, w, b))
    ref = jax.nn.sigmoid(x @ w.T + b)
    assert out.shape == (8, 16)
    assert jnp.allclose(out, ref, atol=1e-5, rtol=1e-5)

    # 2) Weight-resident tiled path (bf16 MXU feed, f32 accumulate), grid (3, 2).
    x, w, b = make_inputs(k2, 512, 256, 384)
    out = jax.block_until_ready(linear_model_forward(x, w, b, tm=128, tk=256))
    ref = jax.nn.sigmoid(x @ w.T + b)
    assert out.shape == (384, 256)
    assert jnp.allclose(out, ref, atol=1e-2, rtol=0)

    # 3) General (M, N, K) tiled path with unaligned dims (exercises pad+slice).
    x, w, b = make_inputs(k3, 500, 300, 250)
    out = jax.block_until_ready(
        linear_model_forward(x, w, b, tm=128, tn=128, tk=128,
                             weight_resident_bytes=0))
    ref = jax.nn.sigmoid(x @ w.T + b)
    assert out.shape == (250, 300)
    assert jnp.allclose(out, ref, atol=1e-2, rtol=0)

    print("KERNEL_OK")
</pallas_src>

<mosaic_0001>
module attributes {stable_mosaic.version = 11 : i64} {
  func.func @_whole_kernel(%arg0: memref<8x32xf32, #tpu.memory_space<vmem>>, %arg1: memref<16x32xf32, #tpu.memory_space<vmem>>, %arg2: memref<1x16xf32, #tpu.memory_space<vmem>>, %arg3: memref<8x16xf32, #tpu.memory_space<vmem>>) attributes {dimension_semantics = [], scalar_prefetch = 0 : i64, scratch_operands = 0 : i64, tpu.core_type = #tpu.core_type<tc>} {
    %c0 = arith.constant 0 : index
    %c0_0 = arith.constant 0 : index
    %0 = vector.load %arg0[%c0, %c0_0] : memref<8x32xf32, #tpu.memory_space<vmem>>, vector<8x32xf32>
    %c0_1 = arith.constant 0 : index
    %c0_2 = arith.constant 0 : index
    %1 = vector.load %arg1[%c0_1, %c0_2] : memref<16x32xf32, #tpu.memory_space<vmem>>, vector<16x32xf32>
    %cst = arith.constant dense<0.000000e+00> : vector<8x16xf32>
    %2 = tpu.matmul %0, %1, %cst {dimension_numbers = #tpu.dot_dimension_numbers<[1], [1], [0], [0], [0, 0, 1, 0], [], []>} : vector<8x32xf32>, vector<16x32xf32>, vector<8x16xf32> -> vector<8x16xf32>
    %c0_3 = arith.constant 0 : index
    %c0_4 = arith.constant 0 : index
    %3 = vector.load %arg2[%c0_3, %c0_4] : memref<1x16xf32, #tpu.memory_space<vmem>>, vector<1x16xf32>
    %4 = vector.broadcast %3 : vector<1x16xf32> to vector<8x16xf32>
    %5 = arith.addf %2, %4 : vector<8x16xf32>
    %cst_5 = arith.constant 5.000000e-01 : f32
    %6 = vector.broadcast %cst_5 : f32 to vector<8x16xf32>
    %7 = arith.mulf %6, %5 : vector<8x16xf32>
    %8 = math.tanh %7 : vector<8x16xf32>
    %cst_6 = arith.constant 5.000000e-01 : f32
    %9 = vector.broadcast %cst_6 : f32 to vector<8x16xf32>
    %10 = arith.mulf %9, %8 : vector<8x16xf32>
    %cst_7 = arith.constant 5.000000e-01 : f32
    %11 = vector.broadcast %cst_7 : f32 to vector<8x16xf32>
    %12 = arith.addf %10, %11 : vector<8x16xf32>
    %c0_8 = arith.constant 0 : index
    %c0_9 = arith.constant 0 : index
    %13 = vector.load %arg3[%c0_8, %c0_9] : memref<8x16xf32, #tpu.memory_space<vmem>>, vector<8x16xf32>
    tpu.vector_store %arg3[%c0_8, %c0_9], %12 {strides = array<i32>} : memref<8x16xf32, #tpu.memory_space<vmem>>, vector<8x16xf32>,
    return
  }
}

</mosaic_0001>

<bundles_post_ra>
// kernel: tpu_custom_call.1
= control target key start
LH: loop header
LB: loop body
LE: loop exit
PB: predicated region body
PF: predicated region fallthrough
CT: control target
= control target key end

     0   :  { %8 = vsyncpa [#allocation3], 0  ;;  %s327_s0 = inlined_call_operand.hbm [shape: f32[8,32], index: 0, kind: input, shape index: {}]   ;;  %s328_s1 = inlined_call_operand.hbm [shape: f32[16,32], index: 1, kind: input, shape index: {}]   ;;  %s329_s2 = inlined_call_operand.vmem [shape: f32[1,16], index: 2, kind: input, shape index: {}]   ;;  %s330_s3 = inlined_call_operand.hbm [shape: f32[8,16], index: 3, kind: output, shape index: {}]  }
   0x1   :  { %9 = vsyncpa [#allocation6], 0 }
   0x2   :  { %10 = vsyncpa [#allocation4], 0  ;;  %s253_s12 = smov [#allocation2]   ;;  %s254_s14 = smov [#allocation5]  }
   0x3   :  { %s17_s13 = sshll.u32 %s253_s12, 4  ;;  %s26_s15 = sshll.u32 %s254_s14, 4  ;;  %s18_s13 = int_to_ptr.vmem [resolvable:$true] %s17_s13  ;;  %s281_s15 = int_to_ptr.vmem [resolvable:$true] %s26_s15 }
   0x4   :  { %s181_s18 = scalar_lea.hbm %s327_s0, 128 }
   0x5   :  { %p182_p0 = scmp.ne.s32.totalorder %s327_s0, %s181_s18  ;;  %p185_p1 = scmp.lt.u32.totalorder %s181_s18, %s327_s0 }
   0x7   :  { %p187_p2 = pnand %p185_p1, %p182_p0 }
   0x9   :  { %190 = shalt.err (!%p187_p2)
}
   0xa   :  { %s191_s23 = scalar_lea.vmem %s18_s13, 128  ;;  %p196_p4 = scmp.lt.s32.totalorder %s18_s13, %s18_s13 }
   0xb   :  { %p192_p3 = scmp.ne.s32.totalorder %s18_s13, %s191_s23  ;;  %p197_p5 = scmp.lt.s32.totalorder %s191_s23, %s191_s23 }
   0xd   :  { %p198_p6 = por %p197_p5, %p196_p4 }
   0xf   :  { %p199_p7 = pnand %p198_p6, %p192_p3 }
  0x11   :  { %202 = shalt.err (!%p199_p7)
}
  0x12   :  { %20 = dma.hbm_to_vmem [thread:$0]  %s327_s0, 128, %s18_s13, [#allocation3]  }
  0x13   :  { %s203_s28 = scalar_lea.hbm %s328_s1, 256 }
  0x14   :  { %p204_p8 = scmp.ne.s32.totalorder %s328_s1, %s203_s28  ;;  %p207_p9 = scmp.lt.u32.totalorder %s203_s28, %s328_s1 }
  0x16   :  { %p209_p10 = pnand %p207_p9, %p204_p8 }
  0x18   :  { %212 = shalt.err (!%p209_p10)
}
  0x19   :  { %s213_s6 = scalar_lea.vmem %s281_s15, 256  ;;  %p218_p12 = scmp.lt.s32.totalorder %s281_s15, %s281_s15 }
  0x1a   :  { %p214_p11 = scmp.ne.s32.totalorder %s281_s15, %s213_s6  ;;  %p219_p13 = scmp.lt.s32.totalorder %s213_s6, %s213_s6 }
  0x1c   :  { %p220_p0 = por %p219_p13, %p218_p12 }
  0x1e   :  { %p221_p1 = pnand %p220_p0, %p214_p11 }
  0x20   :  { %224 = shalt.err (!%p221_p1)
}
  0x21   :  { %s255_s0 = smov 128   ;;  %s256_s7 = smov 8  }
  0x22   :  { %32 = dma.hbm_to_vmem [thread:$0]  %s328_s1, 256, %s281_s15, [#allocation6], %s255_s0, %s255_s0, %s256_s7  }
  0x23   :  { %247 = dma.done.wait [#allocation3], 128  }
  0x24   :  { %248 = vsyncadd [#allocation3], 4294967168 }
  0x25   :  { %249 = dma.done.wait [#allocation6], 256  }
  0x26   :  { %250 = vsyncadd [#allocation6], 4294967040  ;;  %v257_v0 = vmov 0.0|0.0   ;;  %vm258_vm0 = vmmov 0   ;;  %v259_v1 = vmov 0.0   ;;  %vm51_vm1 = vcmask 261120  }
  0x27   :  { %167 = vmatprep.subr.bf16.mxu0 %v257_v0  ;;  %164 = vmatprep.mubr.msk.f32.mxu0 %vm258_vm0, %v259_v1  ;;  %v42_v2 = vld [vmem:[#allocation5] sm:$0xff]  ;;  %v43_v3 = vld [vmem:[#allocation5 + $0x8] sm:$0xff]  ;;  %vm169_vm2 = vmpackc.low %vm51_vm1, %vm51_vm1  ;;  %s260_s1 = smov [#allocation7]   ;;  %vm135_vm3 = vcmask 130048  }
  0x28   :  { %v168_v4 = vpack.c.bf16 %v43_v3, %v42_v2  ;;  %v41_v5 = vld [vmem:[#allocation2] sm:$0xff]  ;;  %s143_s12 = sshll.u32 %s260_s1, 4  ;;  %s144_s12 = int_to_ptr.vmem [resolvable:$true] %s143_s12 }
  0x29   :  { %v153_v6 = vld [vmem:[%s329_s2] ss:$0 sm:$0xff]  ;;  %s225_s13 = scalar_lea.vmem %s144_s12, 128  ;;  %p230_p3 = scmp.lt.s32.totalorder %s144_s12, %s144_s12 }
  0x2a   :  { %170 = vmatpush3.bf16.xpose.msk.msra.mxu0 %vm169_vm2, %v168_v4  ;;  %p226_p2 = scmp.ne.s32.totalorder %s144_s12, %s225_s13  ;;  %p231_p4 = scmp.lt.s32.totalorder %s225_s13, %s225_s13 }
  0x2c   :  { %p232_p5 = por %p231_p4, %p230_p3 }
  0x2e   :  { %p233_p6 = pnand %p232_p5, %p226_p2 }
  0x31   :  { %165 = vmatmul.mubr.msk.f32.vlgmr.msra.gmra.mrb[0].mxu0 %vm51_vm1, %v41_v5 }
 0x104   :  { %v127_v7 = vpop.f32.mrb[0].mxu0 }
 0x105   :  { %v128_v8 = vadd.f32 %v153_v6, %v127_v7  ;;  %v166_v9 = vpop.f32.mrb[1].mxu0 }
 0x107   :  { %v131_v10 = vmul.f32 0.5, %v128_v8 }
 0x109   :  { %179 = vtanh.f32 %v131_v10 }
 0x113   :  { %v180_v11 = vpop.eup %179 }
 0x114   :  { %v133_v12 = vmul.f32 0.5, %v180_v11 }
 0x116   :  { %v134_v13 = vadd.f32 0.5, %v133_v12 }
 0x118   :  { %136 = vst.msk [vmem:[#allocation7] sm:$0xff] %vm135_vm3, %v134_v13 }
 0x119   :  { %236 = shalt.err (!%p233_p6)
}
 0x11a   :  { %s237_s15 = scalar_lea.hbm %s330_s3, 128 }
 0x11b   :  { %p238_p7 = scmp.ne.s32.totalorder %s330_s3, %s237_s15  ;;  %p241_p8 = scmp.lt.u32.totalorder %s237_s15, %s330_s3 }
 0x11d   :  { %p243_p9 = pnand %p241_p8, %p238_p7 }
 0x11f   :  { %246 = shalt.err (!%p243_p9)
}
 0x120   :  { %146 = dma.vmem_to_hbm [thread:$0]  %s144_s12, 128, %s330_s3, [#allocation4]  }
 0x121   :  { %251 = dma.done.wait [#allocation4], 128  }
 0x122   :  { %252 = vsyncadd [#allocation4], 4294967168 }
 0x123   :  { %150 = vsyncpa [#allocation3], 1 }
 0x124   :  { %151 = vsyncpa [#allocation6], 1 }
 0x125   :  { %152 = vsyncpa [#allocation4], 1 }

</bundles_post_ra>
